<compile_context>
chip_gen: v6e
topology: v6e:2x2x1
jax: 0.10.0
libtpu: 0.0.40
codegen_flags: <defaults>
</compile_context>

<pallas_src>
import functools

import numpy as np
import jax
import jax.numpy as jnp
from jax.experimental import pallas as pl
from jax.experimental.pallas import tpu as pltpu


def _make_params(num_in: int):
    """Reference-only parameters, mirroring the PyTorch __init__ (not fed to the kernel)."""
    D = np.zeros((num_in, num_in + 1), dtype=np.float32)
    D[0, 0] = 1.0
    for k in range(1, num_in):
        D[k - 1, k] = -1.0
        D[k, k] = 1.0
    D[num_in - 1, num_in] = 1.0
    b = np.zeros((1, num_in + 1), dtype=np.float32)
    b[0, num_in] = 1.0
    return D, b


def _c2d_kernel(x_ref, o_ref, *, num_in: int):
    # x_ref is a zero-padded (tile_b, n_pad) tile; columns >= num_in are zero.
    x = x_ref[...]
    # x_prev[:, k] = x[:, k-1]; the wraparound column picks up a zero pad
    # column (n_pad - 1 >= num_in), so x_prev[:, 0] == 0 and column 0 reduces
    # to |x[:, 0]|.  roll runs on the XLU, the subtract/abs on the VPU — no MXU.
    x_prev = pltpu.roll(x, shift=1, axis=1)
    diff = x - x_prev
    # b is zero except b[num_in] = 1; y[:, num_in] == x[:, num_in-1] == -diff
    # on that column, so |b - y| == |diff + 1| there and |diff| elsewhere.
    col = jax.lax.broadcasted_iota(jnp.int32, diff.shape, 1)
    bias = (col == num_in).astype(diff.dtype)
    # Lane-dense (multiple-of-128) store: no masked vst.msk partial stores.
    o_ref[...] = jnp.abs(diff + bias)


def cumulative_to_discrete(x, *, tile_b: int = 512):
    """x: (B, num_in) f32 -> (B, num_in + 1) f32, equal to |b - x @ D|."""
    B, N = x.shape
    Np1 = N + 1
    # Padded lane width: multiple of 128 and >= N + 1 (guarantees at least one
    # zero pad column, which the roll wraparound relies on).
    n_pad = pl.cdiv(Np1, 128) * 128
    # Row tile: multiple of 8, capped at tile_b; batch grid amortizes the
    # per-step overhead and lets BlockSpec double-buffer x / out for large B.
    tb = min(tile_b, max(8, pl.cdiv(B, 8) * 8))
    b_pad = pl.cdiv(B, tb) * tb

    x_p = jnp.zeros((b_pad, n_pad), jnp.float32).at[:B, :N].set(
        x.astype(jnp.float32))

    out_p = pl.pallas_call(
        functools.partial(_c2d_kernel, num_in=N),
        out_shape=jax.ShapeDtypeStruct((b_pad, n_pad), jnp.float32),
        grid=(b_pad // tb,),
        in_specs=[pl.BlockSpec((tb, n_pad), lambda i: (i, 0))],
        out_specs=pl.BlockSpec((tb, n_pad), lambda i: (i, 0)),
        compiler_params=pltpu.CompilerParams(
            dimension_semantics=("parallel",)),
    )(x_p)
    # TODO(synk): at the benchmarked 8x32 size this op is launch/DMA bound; in
    # production fuse it into the producer/consumer kernel instead of a
    # standalone pallas_call.
    return out_p[:B, :Np1]


if __name__ == "__main__":
    batch, num_in = 8, 32
    key = jax.random.PRNGKey(0)
    x = jax.random.uniform(key, (batch, num_in), dtype=jnp.float32)

    out = cumulative_to_discrete(x)
    out = jax.block_until_ready(out)

    # Exact reference via the original matmul formulation (numpy, f32).
    D, b = _make_params(num_in)
    x_np = np.asarray(x)
    ref = np.abs(b - x_np @ D)
    np.testing.assert_allclose(np.asarray(out), ref, rtol=1e-6, atol=1e-6)

    print("KERNEL_OK")
</pallas_src>

<mosaic_0001>
module attributes {stable_mosaic.version = 11 : i64} {
  func.func @_c2d_kernel(%arg0: i32, %arg1: memref<8x128xf32, #tpu.memory_space<vmem>>, %arg2: memref<8x128xf32, #tpu.memory_space<vmem>>) attributes {dimension_semantics = [#tpu.dimension_semantics<parallel>], iteration_bounds = array<i64: 1>, scalar_prefetch = 0 : i64, scratch_operands = 0 : i64, tpu.core_type = #tpu.core_type<tc>, window_params = [{transform_indices = @transform_0, window_bounds = array<i64: 8, 128>}, {transform_indices = @transform_1, window_bounds = array<i64: 8, 128>}]} {
    %c0 = arith.constant 0 : index
    %c0_0 = arith.constant 0 : index
    %0 = vector.load %arg1[%c0, %c0_0] : memref<8x128xf32, #tpu.memory_space<vmem>>, vector<8x128xf32>
    %c1_i32 = arith.constant 1 : i32
    %1 = tpu.dynamic_rotate %0 by %c1_i32 dim 1 : vector<8x128xf32>, i32 -> vector<8x128xf32>
    %2 = arith.subf %0, %1 : vector<8x128xf32>
    %3 = tpu.iota {dimensions = array<i32: 1>} : vector<8x128xi32>
    %c32_i32 = arith.constant 32 : i32
    %4 = vector.broadcast %c32_i32 : i32 to vector<8x128xi32>
    %5 = arith.cmpi eq, %3, %4 : vector<8x128xi32>
    %6 = arith.extui %5 : vector<8x128xi1> to vector<8x128xi32>
    %7 = arith.sitofp %6 : vector<8x128xi32> to vector<8x128xf32>
    %8 = arith.addf %2, %7 : vector<8x128xf32>
    %9 = math.absf %8 : vector<8x128xf32>
    %c0_1 = arith.constant 0 : index
    %c0_2 = arith.constant 0 : index
    %10 = vector.load %arg2[%c0_1, %c0_2] : memref<8x128xf32, #tpu.memory_space<vmem>>, vector<8x128xf32>
    tpu.vector_store %arg2[%c0_1, %c0_2], %9 {strides = array<i32>} : memref<8x128xf32, #tpu.memory_space<vmem>>, vector<8x128xf32>,
    return
  }
  func.func @transform_0(%arg0: i32) -> (i32, i32) {
    %c0_i32 = arith.constant 0 : i32
    %c0_i32_0 = arith.constant 0 : i32
    return %arg0, %c0_i32 : i32, i32
  }
  func.func @transform_1(%arg0: i32) -> (i32, i32) {
    %c0_i32 = arith.constant 0 : i32
    %c0_i32_0 = arith.constant 0 : i32
    return %arg0, %c0_i32 : i32, i32
  }
}

</mosaic_0001>

<bundles_post_ra>
// kernel: tpu_custom_call.1
= control target key start
LH: loop header
LB: loop body
LE: loop exit
PB: predicated region body
PF: predicated region fallthrough
CT: control target
= control target key end

     0   :  { %6 = vsyncpa [#allocation3], 0  ;;  %s117_s0 = inlined_call_operand.hbm [shape: f32[8,128], index: 0, kind: input, shape index: {}]   ;;  %s118_s1 = inlined_call_operand.hbm [shape: f32[8,128], index: 1, kind: output, shape index: {}]  }
   0x1   :  { %7 = vsyncpa [#allocation4], 0  ;;  %s97_s6 = smov [#allocation2]  }
   0x2   :  { %s14_s7 = sshll.u32 %s97_s6, 4  ;;  %s15_s7 = int_to_ptr.vmem [resolvable:$true] %s14_s7 }
   0x3   :  { %s61_s8 = scalar_lea.vmem %s15_s7, 128  ;;  %p66_p1 = scmp.lt.s32.totalorder %s15_s7, %s15_s7 }
   0x4   :  { %p62_p0 = scmp.ne.s32.totalorder %s15_s7, %s61_s8  ;;  %p67_p2 = scmp.lt.s32.totalorder %s61_s8, %s61_s8 }
   0x6   :  { %p68_p3 = por %p67_p2, %p66_p1 }
   0x8   :  { %p69_p4 = pnand %p68_p3, %p62_p0 }
   0xa   :  { %72 = shalt.err (!%p69_p4)
}
   0xb   :  { %17 = dma.hbm_to_vmem [thread:$0]  %s117_s0, 128, %s15_s7, [#allocation3]  }
   0xc   :  { %93 = dma.done.wait [#allocation3], 128  }
   0xd   :  { %94 = vsyncadd [#allocation3], 4294967168  ;;  %v21_v0 = vld [vmem:[#allocation2] sm:$0xff]  ;;  %s98_s11 = smov 1   ;;  %v25_v1 = vlaneseq  ;;  %v99_v4 = vmov 0.0   ;;  %s100_s12 = smov [#allocation5]  }
   0xe   :  { %22 = vrot.lane.b32.xlu0 %v21_v0, %s98_s11  ;;  %s39_s13 = sshll.u32 %s100_s12, 4  ;;  %s40_s13 = int_to_ptr.vmem [resolvable:$true] %s39_s13 }
   0xf   :  { %v26_v2 = vand.u32 127, %v25_v1  ;;  %s73_s14 = scalar_lea.vmem %s40_s13, 128  ;;  %p78_p6 = scmp.lt.s32.totalorder %s40_s13, %s40_s13 }
  0x10   :  { %p74_p5 = scmp.ne.s32.totalorder %s40_s13, %s73_s14  ;;  %p79_p7 = scmp.lt.s32.totalorder %s73_s14, %s73_s14 }
  0x11   :  { %vm27_vm0 = vcmp.eq.s32.totalorder %v26_v2, 32 }
  0x12   :  { %v48_v5 = vsel %vm27_vm0, 1.0, %v99_v4  ;;  %p80_p8 = por %p79_p7, %p78_p6 }
  0x14   :  { %p81_p9 = pnand %p80_p8, %p74_p5 }
  0x80   :  { %v23_v3 = vpop.permute.xlu0 %22 }
  0x81   :  { %v24_v6 = vsub.f32 %v21_v0, %v23_v3 }
  0x83   :  { %v30_v7 = vadd.f32 %v48_v5, %v24_v6 }
  0x85   :  { %v31_v8 = vand.u32 2147483647, %v30_v7 }
  0x87   :  { %32 = vst [vmem:[#allocation5] sm:$0xff] %v31_v8 }
  0x88   :  { %84 = shalt.err (!%p81_p9)
}
  0x89   :  { %42 = dma.vmem_to_hbm [thread:$0]  %s40_s13, 128, %s118_s1, [#allocation4]  }
  0x8a   :  { %95 = dma.done.wait [#allocation4], 128  }
  0x8b   :  { %96 = vsyncadd [#allocation4], 4294967168 }
  0x8c   :  { %46 = vsyncpa [#allocation3], 1 }
  0x8d   :  { %47 = vsyncpa [#allocation4], 1 }

</bundles_post_ra>
